<compile_context>
chip_gen: v6e
topology: v6e:2x2x1
jax: 0.10.0
libtpu: 0.0.40
codegen_flags: <defaults>
</compile_context>

<pallas_src>
import functools

import jax
import jax.numpy as jnp
from jax.experimental import pallas as pl
from jax.experimental.pallas import tpu as pltpu


def mlp_kernel(x_ref, w1_ref, b1_ref, w2_ref, b2_ref, w3_ref, b3_ref, o_ref):
    # x_ref: (tm, enc_in) row tile; weights/biases are fully VMEM-resident
    # (constant index maps); biases are f32 rows broadcast over the tile.
    x = x_ref[...]

    h1 = jnp.dot(x, w1_ref[...], preferred_element_type=jnp.float32) + b1_ref[...]
    h1 = jnp.maximum(h1, 0.0)                      # ReLU (dropout = identity, eval)

    h2 = jnp.dot(h1.astype(w2_ref.dtype), w2_ref[...],
                 preferred_element_type=jnp.float32) + b2_ref[...]
    h2 = jnp.maximum(h2, 0.0)                      # ReLU (dropout = identity, eval)

    h3 = jnp.dot(h2.astype(w3_ref.dtype), w3_ref[...],
                 preferred_element_type=jnp.float32) + b3_ref[...]
    out = jnp.maximum(h3, 0.0)                     # final F.relu

    o_ref[...] = out.astype(o_ref.dtype)


def _round_up(a, b):
    return (a + b - 1) // b * b


def _vmem_bytes_estimate(tm, enc_in, h1, h2, c_out, in_bytes, out_bytes):
    # Double-buffered x/out tiles + (double-buffered) resident weights +
    # f32 intermediates h1/h2 produced inside the body.
    x_tiles = 2 * tm * enc_in * in_bytes
    o_tiles = 2 * tm * c_out * out_bytes
    weights = 2 * (enc_in * h1 + h1 * h2 + h2 * c_out) * in_bytes
    biases = 2 * (h1 + h2 + c_out) * 4
    inter = tm * (h1 + h2) * 4
    return x_tiles + o_tiles + weights + biases + inter


@functools.partial(jax.jit, static_argnames=("tm", "param_dtype"))
def mlp_forward(x, w1, b1, w2, b2, w3, b3, *, tm=1024, param_dtype=jnp.bfloat16):
    """x: (..., enc_in) -> (..., c_out); the whole MLP is one fused Pallas kernel.

    tm: row tile height; sweep 512-2048 for large N (per-step overhead, not
        vregs, is what matters — intermediates live in VMEM either way).
    param_dtype: dtype for x and the weights inside the kernel (default bf16,
        native MXU input on v6e/v7x); accumulation, biases and output stay f32.
    """
    orig_shape = x.shape
    enc_in = orig_shape[-1]
    c_out = w3.shape[1]
    h1_dim, h2_dim = w1.shape[1], w2.shape[1]
    out_dtype = x.dtype

    x2d = x.reshape(-1, enc_in)
    n = x2d.shape[0]

    # Row tiling: no padding — Pallas masks the ragged last tile (rows are
    # independent; OOB writes in the tail tile are dropped). Cap tm so the
    # parallel grid has >= 2 steps (keeps both v7x TensorCores busy).
    tm_eff = max(8, min(tm, _round_up(-(-n // 2), 8)))
    grid = (pl.cdiv(n, tm_eff),)

    if param_dtype is not None:
        x2d = x2d.astype(param_dtype)
        w1 = w1.astype(param_dtype)
        w2 = w2.astype(param_dtype)
        w3 = w3.astype(param_dtype)

    b1r = b1.reshape(1, h1_dim).astype(jnp.float32)
    b2r = b2.reshape(1, h2_dim).astype(jnp.float32)
    b3r = b3.reshape(1, c_out).astype(jnp.float32)

    in_bytes = jnp.dtype(x2d.dtype).itemsize
    out_bytes = jnp.dtype(out_dtype).itemsize
    vmem_est = _vmem_bytes_estimate(tm_eff, enc_in, h1_dim, h2_dim, c_out,
                                    in_bytes, out_bytes)
    vmem_limit = None
    if vmem_est > 12 * 1024 * 1024:          # v5e default scoped VMEM is ~16 MiB
        vmem_limit = int(min(2 * vmem_est, 64 * 1024 * 1024))

    out2d = pl.pallas_call(
        mlp_kernel,
        out_shape=jax.ShapeDtypeStruct((n, c_out), out_dtype),
        grid_spec=pltpu.PrefetchScalarGridSpec(
            num_scalar_prefetch=0,
            grid=grid,
            in_specs=[
                pl.BlockSpec((tm_eff, enc_in), lambda i: (i, 0)),   # x row tile
                pl.BlockSpec((enc_in, h1_dim), lambda i: (0, 0)),   # W1 (resident)
                pl.BlockSpec((1, h1_dim), lambda i: (0, 0)),        # b1
                pl.BlockSpec((h1_dim, h2_dim), lambda i: (0, 0)),   # W2
                pl.BlockSpec((1, h2_dim), lambda i: (0, 0)),        # b2
                pl.BlockSpec((h2_dim, c_out), lambda i: (0, 0)),    # W3
                pl.BlockSpec((1, c_out), lambda i: (0, 0)),         # b3
            ],
            out_specs=pl.BlockSpec((tm_eff, c_out), lambda i: (i, 0)),
        ),
        compiler_params=pltpu.CompilerParams(
            dimension_semantics=("parallel",),   # shard row tiles over v7x's 2 TCs
            vmem_limit_bytes=vmem_limit,
        ),
    )(x2d, w1, b1r, w2, b2r, w3, b3r)

    return out2d.reshape(*orig_shape[:-1], c_out)


def init_linear(key, fan_in, fan_out, dtype=jnp.float32):
    """PyTorch nn.Linear-style uniform(-1/sqrt(fan_in), 1/sqrt(fan_in)) init."""
    kw, kb = jax.random.split(key)
    bound = 1.0 / (fan_in ** 0.5)
    w = jax.random.uniform(kw, (fan_in, fan_out), dtype, minval=-bound, maxval=bound)
    b = jax.random.uniform(kb, (fan_out,), dtype, minval=-bound, maxval=bound)
    return w, b


if __name__ == "__main__":
    # Small shapes consistent with the module: args.enc_in=32, args.c_out=16.
    batch, seq, enc_in, c_out = 2, 8, 32, 16

    root = jax.random.PRNGKey(0)
    kx, k1, k2, k3, kx2 = jax.random.split(root, 5)

    x = jax.random.normal(kx, (batch, seq, enc_in), jnp.float32)
    w1, b1 = init_linear(k1, enc_in, 256)
    w2, b2 = init_linear(k2, 256, 128)
    w3, b3 = init_linear(k3, 128, c_out)

    def ref_fn(xx):
        h = jnp.maximum(xx @ w1 + b1, 0.0)
        h = jnp.maximum(h @ w2 + b2, 0.0)
        return jnp.maximum(h @ w3 + b3, 0.0)

    # Exact-precision path (param_dtype=None), tight tolerance.
    out_f32 = jax.block_until_ready(
        mlp_forward(x, w1, b1, w2, b2, w3, b3, param_dtype=None))
    assert out_f32.shape == (batch, seq, c_out), out_f32.shape
    assert jnp.allclose(out_f32, ref_fn(x), atol=1e-4, rtol=1e-4)

    # Default bf16-param path: looser tolerance vs f32 reference (expected).
    out_bf = jax.block_until_ready(mlp_forward(x, w1, b1, w2, b2, w3, b3))
    assert out_bf.shape == (batch, seq, c_out), out_bf.shape
    assert jnp.allclose(out_bf, ref_fn(x), atol=5e-2, rtol=5e-2)

    # Ragged-row run: N=150 exercises the masked last tile + 2-step parallel grid.
    x2 = jax.random.normal(kx2, (3, 50, enc_in), jnp.float32)
    out2 = jax.block_until_ready(mlp_forward(x2, w1, b1, w2, b2, w3, b3))
    assert out2.shape == (3, 50, c_out), out2.shape
    assert jnp.allclose(out2, ref_fn(x2), atol=5e-2, rtol=5e-2)

    # TODO(synk): nn.Dropout train-mode masking (pltpu.prng_*) not implemented;
    # forward here matches eval/inference semantics (dropout = identity).
    print("KERNEL_OK")
</pallas_src>

<mosaic_0001>
module attributes {stable_mosaic.version = 11 : i64} {
  func.func @mlp_kernel(%arg0: i32, %arg1: memref<8x32xf32, #tpu.memory_space<vmem>>, %arg2: memref<32x256xf32, #tpu.memory_space<vmem>>, %arg3: memref<1x256xf32, #tpu.memory_space<vmem>>, %arg4: memref<256x128xf32, #tpu.memory_space<vmem>>, %arg5: memref<1x128xf32, #tpu.memory_space<vmem>>, %arg6: memref<128x16xf32, #tpu.memory_space<vmem>>, %arg7: memref<1x16xf32, #tpu.memory_space<vmem>>, %arg8: memref<8x16xf32, #tpu.memory_space<vmem>>) attributes {dimension_semantics = [#tpu.dimension_semantics<parallel>], iteration_bounds = array<i64: 2>, scalar_prefetch = 0 : i64, scratch_operands = 0 : i64, tpu.core_type = #tpu.core_type<tc>, window_params = [{transform_indices = @transform_0, window_bounds = array<i64: 8, 32>}, {pipeline_mode = #tpu.pipeline_mode<synchronous>, transform_indices = @transform_1, window_bounds = array<i64: 32, 256>}, {pipeline_mode = #tpu.pipeline_mode<synchronous>, transform_indices = @transform_2, window_bounds = array<i64: 1, 256>}, {pipeline_mode = #tpu.pipeline_mode<synchronous>, transform_indices = @transform_3, window_bounds = array<i64: 256, 128>}, {pipeline_mode = #tpu.pipeline_mode<synchronous>, transform_indices = @transform_4, window_bounds = array<i64: 1, 128>}, {pipeline_mode = #tpu.pipeline_mode<synchronous>, transform_indices = @transform_5, window_bounds = array<i64: 128, 16>}, {pipeline_mode = #tpu.pipeline_mode<synchronous>, transform_indices = @transform_6, window_bounds = array<i64: 1, 16>}, {transform_indices = @transform_7, window_bounds = array<i64: 8, 16>}]} {
    %c0 = arith.constant 0 : index
    %c0_0 = arith.constant 0 : index
    %0 = vector.load %arg1[%c0, %c0_0] : memref<8x32xf32, #tpu.memory_space<vmem>>, vector<8x32xf32>
    %c0_1 = arith.constant 0 : index
    %c0_2 = arith.constant 0 : index
    %1 = vector.load %arg2[%c0_1, %c0_2] : memref<32x256xf32, #tpu.memory_space<vmem>>, vector<32x256xf32>
    %cst = arith.constant dense<0.000000e+00> : vector<8x256xf32>
    %2 = tpu.matmul %0, %1, %cst {dimension_numbers = #tpu.dot_dimension_numbers<[1], [0], [0], [1], [0, 0, 1, 1], [], []>} : vector<8x32xf32>, vector<32x256xf32>, vector<8x256xf32> -> vector<8x256xf32>
    %c0_3 = arith.constant 0 : index
    %c0_4 = arith.constant 0 : index
    %3 = vector.load %arg3[%c0_3, %c0_4] : memref<1x256xf32, #tpu.memory_space<vmem>>, vector<1x256xf32>
    %4 = vector.broadcast %3 : vector<1x256xf32> to vector<8x256xf32>
    %5 = arith.addf %2, %4 : vector<8x256xf32>
    %cst_5 = arith.constant 0.000000e+00 : f32
    %6 = vector.broadcast %cst_5 : f32 to vector<8x256xf32>
    %7 = arith.maximumf %5, %6 : vector<8x256xf32>
    %c0_6 = arith.constant 0 : index
    %c0_7 = arith.constant 0 : index
    %8 = vector.load %arg4[%c0_6, %c0_7] : memref<256x128xf32, #tpu.memory_space<vmem>>, vector<256x128xf32>
    %cst_8 = arith.constant dense<0.000000e+00> : vector<8x128xf32>
    %9 = tpu.matmul %7, %8, %cst_8 {dimension_numbers = #tpu.dot_dimension_numbers<[1], [0], [0], [1], [0, 0, 1, 1], [], []>} : vector<8x256xf32>, vector<256x128xf32>, vector<8x128xf32> -> vector<8x128xf32>
    %c0_9 = arith.constant 0 : index
    %c0_10 = arith.constant 0 : index
    %10 = vector.load %arg5[%c0_9, %c0_10] : memref<1x128xf32, #tpu.memory_space<vmem>>, vector<1x128xf32>
    %11 = vector.broadcast %10 : vector<1x128xf32> to vector<8x128xf32>
    %12 = arith.addf %9, %11 : vector<8x128xf32>
    %cst_11 = arith.constant 0.000000e+00 : f32
    %13 = vector.broadcast %cst_11 : f32 to vector<8x128xf32>
    %14 = arith.maximumf %12, %13 : vector<8x128xf32>
    %c0_12 = arith.constant 0 : index
    %c0_13 = arith.constant 0 : index
    %15 = vector.load %arg6[%c0_12, %c0_13] : memref<128x16xf32, #tpu.memory_space<vmem>>, vector<128x16xf32>
    %cst_14 = arith.constant dense<0.000000e+00> : vector<8x16xf32>
    %16 = tpu.matmul %14, %15, %cst_14 {dimension_numbers = #tpu.dot_dimension_numbers<[1], [0], [0], [1], [0, 0, 1, 1], [], []>} : vector<8x128xf32>, vector<128x16xf32>, vector<8x16xf32> -> vector<8x16xf32>
    %c0_15 = arith.constant 0 : index
    %c0_16 = arith.constant 0 : index
    %17 = vector.load %arg7[%c0_15, %c0_16] : memref<1x16xf32, #tpu.memory_space<vmem>>, vector<1x16xf32>
    %18 = vector.broadcast %17 : vector<1x16xf32> to vector<8x16xf32>
    %19 = arith.addf %16, %18 : vector<8x16xf32>
    %cst_17 = arith.constant 0.000000e+00 : f32
    %20 = vector.broadcast %cst_17 : f32 to vector<8x16xf32>
    %21 = arith.maximumf %19, %20 : vector<8x16xf32>
    %c0_18 = arith.constant 0 : index
    %c0_19 = arith.constant 0 : index
    %22 = vector.load %arg8[%c0_18, %c0_19] : memref<8x16xf32, #tpu.memory_space<vmem>>, vector<8x16xf32>
    tpu.vector_store %arg8[%c0_18, %c0_19], %21 {strides = array<i32>} : memref<8x16xf32, #tpu.memory_space<vmem>>, vector<8x16xf32>,
    return
  }
  func.func @transform_0(%arg0: i32) -> (i32, i32) {
    %c0_i32 = arith.constant 0 : i32
    %c0_i32_0 = arith.constant 0 : i32
    return %arg0, %c0_i32 : i32, i32
  }
  func.func @transform_1(%arg0: i32) -> (i32, i32) {
    %c0_i32 = arith.constant 0 : i32
    %c0_i32_0 = arith.constant 0 : i32
    %c0_i32_1 = arith.constant 0 : i32
    return %c0_i32, %c0_i32_0 : i32, i32
  }
  func.func @transform_2(%arg0: i32) -> (i32, i32) {
    %c0_i32 = arith.constant 0 : i32
    %c0_i32_0 = arith.constant 0 : i32
    %c0_i32_1 = arith.constant 0 : i32
    return %c0_i32, %c0_i32_0 : i32, i32
  }
  func.func @transform_3(%arg0: i32) -> (i32, i32) {
    %c0_i32 = arith.constant 0 : i32
    %c0_i32_0 = arith.constant 0 : i32
    %c0_i32_1 = arith.constant 0 : i32
    return %c0_i32, %c0_i32_0 : i32, i32
  }
  func.func @transform_4(%arg0: i32) -> (i32, i32) {
    %c0_i32 = arith.constant 0 : i32
    %c0_i32_0 = arith.constant 0 : i32
    %c0_i32_1 = arith.constant 0 : i32
    return %c0_i32, %c0_i32_0 : i32, i32
  }
  func.func @transform_5(%arg0: i32) -> (i32, i32) {
    %c0_i32 = arith.constant 0 : i32
    %c0_i32_0 = arith.constant 0 : i32
    %c0_i32_1 = arith.constant 0 : i32
    return %c0_i32, %c0_i32_0 : i32, i32
  }
  func.func @transform_6(%arg0: i32) -> (i32, i32) {
    %c0_i32 = arith.constant 0 : i32
    %c0_i32_0 = arith.constant 0 : i32
    %c0_i32_1 = arith.constant 0 : i32
    return %c0_i32, %c0_i32_0 : i32, i32
  }
  func.func @transform_7(%arg0: i32) -> (i32, i32) {
    %c0_i32 = arith.constant 0 : i32
    %c0_i32_0 = arith.constant 0 : i32
    return %arg0, %c0_i32 : i32, i32
  }
}

</mosaic_0001>

<bundles_post_ra>
// kernel: mlp_forward.1
= control target key start
LH: loop header
LB: loop body
LE: loop exit
PB: predicated region body
PF: predicated region fallthrough
CT: control target
= control target key end

     0   :  { %12 = vsyncpa [#allocation3], 0  ;;  %s1176_s0 = inlined_call_operand.vmem [shape: f32[16,32], index: 0, kind: input, shape index: {}]   ;;  %s1177_s1 = inlined_call_operand.vmem [shape: f32[32,256], index: 1, kind: input, shape index: {}]   ;;  %s1178_s2 = inlined_call_operand.vmem [shape: f32[1,256], index: 2, kind: input, shape index: {}]   ;;  %s1179_s3 = inlined_call_operand.hbm [shape: f32[256,128], index: 3, kind: input, shape index: {}]   ;;  %s1180_s4 = inlined_call_operand.vmem [shape: f32[1,128], index: 4, kind: input, shape index: {}]   ;;  %s1181_s5 = inlined_call_operand.vmem [shape: f32[128,16], index: 5, kind: input, shape index: {}]   ;;  %s1182_s6 = inlined_call_operand.vmem [shape: f32[1,16], index: 6, kind: input, shape index: {}]   ;;  %s1183_s7 = inlined_call_operand.hbm [shape: f32[16,16], index: 7, kind: output, shape index: {}]  }
   0x1   :  { %13 = vsyncpa [#allocation4], 0 }
   0x2   :  { %15 = vsyncpa [#allocation4 + $0x1], 0  ;;  %s972_s24 = smov 0   ;;  %s974_s25 = smov 0  }
   0x3   :  { %s976_s26 = smov 0   ;;  %s978_s27 = smov 0  }
   0x4 LB: > { %s993_s28 = sadd.s32 4294967295, %s924_s27   ;;  %s678_s29 = sadd.s32 4294967294, %s924_s27   ;;  %s924_s27 = sphi %s978_s27, %s1191_s27   ;;  %s920_s26 = sphi %s976_s26, %s1190_s26   ;;  %s916_s25 = sphi %s974_s25, %s1189_s25   ;;  %s912_s24 = sphi %s972_s24, %s1188_s24  }
   0x5   : > { %s997_s30 = sadd.s32 1, %s924_s27   ;;  %s180_s8 = sadd.s32 1, %s920_s26 }
   0x6   : > { %s177_s9 = ssub.s32 %s924_s27, %s997_s30  ;;  %p190_p0 = scmp.ne.s32.totalorder %s920_s26, %s916_s25 }
   0x7   : > { %p178_p1 = scmp.eq.s32.totalorder %s177_s9, 0  ;;  %p191_p2 = scmp.eq.s32.totalorder %s993_s28, 1 }
   0x8   : > { %p196_p3 = scmp.ne.s32.totalorder %s916_s25, %s912_s24  ;;  %p197_p4 = scmp.eq.s32.totalorder %s678_s29, 1 }
   0x9   : > { %s1008_s10 = scalar_select %p178_p1, %s920_s26, %s180_s8  }
   0xa   : > { %p1010_p5 = por %p191_p2, %p190_p0  ;;  %p1014_p6 = por %p197_p4, %p196_p3 }
   0xb   : > { %p679_p7 = scmp.ge.s32.totalorder %s924_s27, 1  ;;  %p204_p8 = scmp.lt.s32.totalorder %s924_s27, 3 }
   0xc   : > { %s1185_s12 = scalar_select %p1014_p6, 1, 0 }
   0xd   : > { %p794_p9 = scmp.eq.s32.totalorder %s993_s28, 0  ;;  %p1021_p10 = pnand %p679_p7, %p204_p8 }
   0xe   : > { %s926_s14 = smov [#allocation2]  }
   0xf   : > { %s222_s15 = sshll.u32 %s926_s14, 4  ;;  %p786_p11 = pneg %p1021_p10  ;;  %s223_s15 = int_to_ptr.vmem [resolvable:$true] %s222_s15 }
  0x10   : > { %s845_s16 = scalar_lea.vmem %s223_s15, 4096  ;;  %p853_p3 = scmp.lt.s32.totalorder %s223_s15, %s223_s15 }
  0x11   : > { %p787_p12 = pnand %p794_p9, %p786_p11  ;;  %p846_p0 = scmp.ne.s32.totalorder %s223_s15, %s845_s16 }
  0x12   : > { %p854_p4 = scmp.lt.s32.totalorder %s845_s16, %s845_s16 }
  0x13   : > { %p836_p13 = pneg %p787_p12 }
  0x14   : > { %p855_p6 = por %p854_p4, %p853_p3 }
  0x15   : > { %p848_p1 = pnand %p846_p0, %p836_p13 }
  0x17   : > { %p849_p2 = pneg %p848_p1 }
  0x19   : > { %p856_p7 = pnand %p855_p6, %p849_p2 }
  0x1b   : > { %859 = shalt.err (!%p856_p7)
}
  0x1c   : > { %s927_s17 = smov 128   ;;  %s928_s18 = smov 8  }
  0x1d   : > { %789 = dma.hbm_to_vmem [thread:$0]  (!%p787_p12), %s1179_s3, 4096, %s223_s15, [#allocation3], %s927_s17, %s927_s17, %s928_s18  }
  0x1e   : > { %254 = sbr.rel (%p1021_p10) target bundleno = 656 (0x290), region = 48 }
  0x23   : > { %903 = dma.done.wait (%p794_p9), [#allocation3], 4096  }
  0x24   : > { %905 = vsyncadd (%p794_p9), [#allocation3], 4294963200  ;;  %p285_p8 = scmp.lt.s32.totalorder %s993_s28, 1  ;;  %v929_v0 = vmov 0.0   ;;  %v297_v1 = vld [vmem:[%s1177_s1 + $0x38] sm:$0xff]  ;;  %v296_v2 = vld [vmem:[%s1177_s1 + $0x30] sm:$0xff]  ;;  %v300_v53 = vlaneseq }
  0x25   : > { %378 = vmatprep.mubr.f32.mxu0 %v929_v0  ;;  %v295_v3 = vld [vmem:[%s1177_s1 + $0x28] sm:$0xff]  ;;  %338 = vmatprep.subr.mxu0 %v297_v1  ;;  %v294_v4 = vld [vmem:[%s1177_s1 + $0x20] sm:$0xff]  ;;  %v293_v5 = vld [vmem:[%s1177_s1 + $0x18] sm:$0xff]  ;;  %vm310_vm0 = vcmask 261120   ;;  %vm930_vm1 = vmmov 0   ;;  %s282_s23 = sand.u32 1, %s916_s25  }
  0x26   : > { %s286_s21 = scalar_select %p285_p8, %s993_s28, 1  ;;  %339 = vmatpush1.msra.mxu0 %v296_v2  ;;  %v292_v6 = vld [vmem:[%s1177_s1 + $0x10] sm:$0xff]  ;;  %v418_v7 = vld [vmem:[#allocation2 + $0xf8] sm:$0xff]  ;;  %v291_v10 = vld [vmem:[%s1177_s1 + $0x8] sm:$0xff]  ;;  %v301_v54 = vshrl.u32 %v300_v53, 7  ;;  %vm591_vm2 = vcmask 130048  }
  0x27   : > { %340 = vmatprep.subr.mxu0 %v295_v3  ;;  %v402_v8 = vld [vmem:[#allocation2 + $0x78] sm:$0xff]  ;;  %v417_v9 = vld [vmem:[#allocation2 + $0xf0] sm:$0xff]  ;;  %693 = vmatprep.subr.mxu1 %v418_v7  ;;  %v290_v12 = vld [vmem:[%s1177_s1] sm:$0xff]  ;;  %s690_s9 = sshll.u32 %s993_s28, 7  ;;  %s594_s18 = scalar_lea.sflag [#allocation4], %s282_s23 }
  0x28   : > { %s685_s14 = sshll.u32 %s286_s21, 3  ;;  %341 = vmatpush1.msra.mxu0 %v294_v4  ;;  %v401_v11 = vld [vmem:[#allocation2 + $0x70] sm:$0xff]  ;;  %694 = vmatpush3.msra.mxu1 %v402_v8  ;;  %v416_v13 = vld [vmem:[#allocation2 + $0xe8] sm:$0xff]  ;;  %v415_v16 = vld [vmem:[#allocation2 + $0xe0] sm:$0xff]  ;;  %v302_v55 = vsub.s32 0, %v301_v54  ;;  %v306_v57 = vsub.s32 1, %v301_v54  ;;  %s605_s17 = scalar_lea.hbm %s1183_s7, %s690_s9 }
  0x29   : > { %s288_s29 = scalar_lea.vmem %s1176_s0, %s685_s14  ;;  %342 = vmatprep.subr.mxu0 %v293_v5  ;;  %695 = vmatprep.subr.mxu1 %v417_v9  ;;  %v400_v15 = vld [vmem:[#allocation2 + $0x68] sm:$0xff]  ;;  %v399_v17 = vld [vmem:[#allocation2 + $0x60] sm:$0xff]  ;;  %v414_v18 = vld [vmem:[#allocation2 + $0xd8] sm:$0xff]  ;;  %s931_s20 = smov [#allocation5]  }
  0x2a   : > { %343 = vmatpush1.msra.mxu0 %v292_v6  ;;  %v289_v14 = vld [vmem:[%s288_s29] sm:$0xff]  ;;  %696 = vmatpush3.msra.mxu1 %v401_v11  ;;  %v398_v19 = vld [vmem:[#allocation2 + $0x58] sm:$0xff]  ;;  %v413_v20 = vld [vmem:[#allocation2 + $0xd0] sm:$0xff]  ;;  %s684_s29 = sshll.u32 %s282_s23, 3  ;;  %s864_s28 = sshll.u32 %s931_s20, 4  ;;  %s865_s28 = int_to_ptr.vmem [resolvable:$false] %s864_s28 }
  0x2b   : > { %344 = vmatprep.subr.mxu0 %v291_v10  ;;  %697 = vmatprep.subr.mxu1 %v416_v13  ;;  %v397_v21 = vld [vmem:[#allocation2 + $0x50] sm:$0xff]  ;;  %v412_v22 = vld [vmem:[#allocation2 + $0xc8] sm:$0xff]  ;;  %v411_v24 = vld [vmem:[#allocation2 + $0xc0] sm:$0xff]  ;;  %s284_s13 = scalar_lea.vmem [#allocation5], %s684_s29  ;;  %s866_s22 = scalar_lea.vmem %s865_s28, 256 }
  0x2c   : > { %345 = vmatpush1.msra.mxu0 %v290_v12  ;;  %698 = vmatpush3.msra.mxu1 %v400_v15  ;;  %v396_v23 = vld [vmem:[#allocation2 + $0x48] sm:$0xff]  ;;  %v395_v25 = vld [vmem:[#allocation2 + $0x40] sm:$0xff]  ;;  %v410_v26 = vld [vmem:[#allocation2 + $0xb8] sm:$0xff]  ;;  %s607_s14 = sshll.u32 %s284_s13, 4  ;;  %s608_s14 = int_to_ptr.vmem [resolvable:$true] %s607_s14 }
  0x2d   : > { %686 = vmatmul.mubr.msk.f32.vlgmr.msra.gmra.mxu0 %vm310_vm0, %v289_v14  ;;  %699 = vmatprep.subr.mxu1 %v415_v16  ;;  %v394_v27 = vld [vmem:[#allocation2 + $0x38] sm:$0xff]  ;;  %v409_v28 = vld [vmem:[#allocation2 + $0xb0] sm:$0xff]  ;;  %v408_v30 = vld [vmem:[#allocation2 + $0xa8] sm:$0xff]  ;;  %s860_s19 = scalar_lea.vmem %s608_s14, 128  ;;  %p867_p11 = scmp.lt.s32.totalorder %s608_s14, %s865_s28 }
  0x2e   : > { %745 = vmatprep.subr.mxu0 %v929_v0  ;;  %700 = vmatpush3.msra.mxu1 %v399_v17  ;;  %v393_v29 = vld [vmem:[#allocation2 + $0x30] sm:$0xff]  ;;  %v392_v31 = vld [vmem:[#allocation2 + $0x28] sm:$0xff]  ;;  %v407_v32 = vld [vmem:[#allocation2 + $0xa0] sm:$0xff]  ;;  %p861_p6 = scmp.ne.s32.totalorder %s608_s14, %s860_s19  ;;  %p868_p12 = scmp.lt.s32.totalorder %s866_s22, %s860_s19 }
  0x2f   : > { %701 = vmatprep.subr.mxu1 %v414_v18  ;;  %v391_v33 = vld [vmem:[#allocation2 + $0x20] sm:$0xff]  ;;  %v406_v34 = vld [vmem:[#allocation2 + $0x98] sm:$0xff]  ;;  %v405_v36 = vld [vmem:[#allocation2 + $0x90] sm:$0xff]  ;;  %777 = vmatprep.mubr.msk.f32.mxu0 %vm930_vm1, %v929_v0 }
  0x30   : > { %702 = vmatpush3.msra.mxu1 %v398_v19  ;;  %v390_v35 = vld [vmem:[#allocation2 + $0x18] sm:$0xff]  ;;  %v389_v37 = vld [vmem:[#allocation2 + $0x10] sm:$0xff]  ;;  %v404_v38 = vld [vmem:[#allocation2 + $0x88] sm:$0xff]  ;;  %p862_p9 = pnand %p861_p6, %p1010_p5  ;;  %p869_p13 = por %p868_p12, %p867_p11 }
  0x31   : > { %703 = vmatprep.subr.mxu1 %v413_v20  ;;  %v388_v39 = vld [vmem:[#allocation2 + $0x8] sm:$0xff]  ;;  %v403_v40 = vld [vmem:[#allocation2 + $0x80] sm:$0xff]  ;;  %v512_v42 = vld [vmem:[%s1181_s5 + $0x78] sm:$0xff] }
  0x32   : > { %704 = vmatpush3.msra.mxu1 %v397_v21  ;;  %v387_v41 = vld [vmem:[#allocation2] sm:$0xff]  ;;  %v511_v43 = vld [vmem:[%s1181_s5 + $0x70] sm:$0xff]  ;;  %746 = vmatpush3.msra.mxu0 %v512_v42  ;;  %v510_v44 = vld [vmem:[%s1181_s5 + $0x68] sm:$0xff]  ;;  %p863_p10 = pneg %p862_p9 }
  0x33   : > { %705 = vmatprep.subr.mxu1 %v412_v22  ;;  %747 = vmatprep.subr.mxu0 %v929_v0  ;;  %v509_v45 = vld [vmem:[%s1181_s5 + $0x60] sm:$0xff]  ;;  %v508_v46 = vld [vmem:[%s1181_s5 + $0x58] sm:$0xff]  ;;  %v507_v47 = vld [vmem:[%s1181_s5 + $0x50] sm:$0xff] }
  0x34   : > { %706 = vmatpush3.msra.mxu1 %v396_v23  ;;  %748 = vmatpush3.msra.mxu0 %v511_v43  ;;  %v506_v48 = vld [vmem:[%s1181_s5 + $0x48] sm:$0xff]  ;;  %v505_v49 = vld [vmem:[%s1181_s5 + $0x40] sm:$0xff]  ;;  %v504_v50 = vld [vmem:[%s1181_s5 + $0x38] sm:$0xff]  ;;  %p870_p0 = pnand %p869_p13, %p863_p10 }
  0x35   : > { %707 = vmatprep.subr.mxu1 %v411_v24  ;;  %749 = vmatprep.subr.mxu0 %v929_v0  ;;  %v503_v51 = vld [vmem:[%s1181_s5 + $0x30] sm:$0xff]  ;;  %v502_v52 = vld [vmem:[%s1181_s5 + $0x28] sm:$0xff]  ;;  %v298_v56 = vld [vmem:[%s1178_s2] sm:$0x3] }
  0x36   : > { %708 = vmatpush3.msra.mxu1 %v395_v25  ;;  %750 = vmatpush3.msra.mxu0 %v510_v44  ;;  %v303_v58 = vrot.slane %v298_v56, %v302_v55  ;;  %v307_v59 = vrot.slane %v298_v56, %v306_v57  ;;  %v501_v3 = vld [vmem:[%s1181_s5 + $0x20] sm:$0xff]  ;;  %v500_v4 = vld [vmem:[%s1181_s5 + $0x18] sm:$0xff]  ;;  %v499_v5 = vld [vmem:[%s1181_s5 + $0x10] sm:$0xff] }
  0x37   : > { %709 = vmatprep.subr.mxu1 %v410_v26  ;;  %751 = vmatprep.subr.mxu0 %v929_v0  ;;  %v498_v6 = vld [vmem:[%s1181_s5 + $0x8] sm:$0xff]  ;;  %v497_v7 = vld [vmem:[%s1181_s5] sm:$0xff] }
  0x38   : > { %710 = vmatpush3.msra.mxu1 %v394_v27  ;;  %752 = vmatpush3.msra.mxu0 %v509_v45  ;;  %v687_v9 = vld [vmem:[%s1180_s4] ss:$0 sm:$0xff] }
  0x39   : > { %711 = vmatprep.subr.mxu1 %v409_v28  ;;  %753 = vmatprep.subr.mxu0 %v929_v0  ;;  %v688_v14 = vld [vmem:[%s1182_s6] ss:$0 sm:$0xff] }
  0x3a   : > { %712 = vmatpush3.msra.mxu1 %v393_v29  ;;  %754 = vmatpush3.msra.mxu0 %v508_v46 }
  0x3b   : > { %713 = vmatprep.subr.mxu1 %v408_v30  ;;  %755 = vmatprep.subr.mxu0 %v929_v0 }
  0x3c   : > { %714 = vmatpush3.msra.mxu1 %v392_v31  ;;  %756 = vmatpush3.msra.mxu0 %v507_v47 }
  0x3d   : > { %715 = vmatprep.subr.mxu1 %v407_v32  ;;  %757 = vmatprep.subr.mxu0 %v929_v0 }
  0x3e   : > { %716 = vmatpush3.msra.mxu1 %v391_v33  ;;  %758 = vmatpush3.msra.mxu0 %v506_v48 }
  0x3f   : > { %717 = vmatprep.subr.mxu1 %v406_v34  ;;  %759 = vmatprep.subr.mxu0 %v929_v0 }
  0x40   : > { %718 = vmatpush3.msra.mxu1 %v390_v35  ;;  %760 = vmatpush3.msra.mxu0 %v505_v49 }
  0x41   : > { %719 = vmatprep.subr.mxu1 %v405_v36  ;;  %761 = vmatprep.subr.mxu0 %v929_v0 }
  0x42   : > { %720 = vmatpush3.msra.mxu1 %v389_v37  ;;  %762 = vmatpush3.msra.mxu0 %v504_v50 }
  0x43   : > { %721 = vmatprep.subr.mxu1 %v404_v38  ;;  %763 = vmatprep.subr.mxu0 %v929_v0 }
  0x44   : > { %722 = vmatpush3.msra.mxu1 %v388_v39  ;;  %764 = vmatpush3.msra.mxu0 %v503_v51 }
  0x45   : > { %723 = vmatprep.subr.mxu1 %v403_v40  ;;  %765 = vmatprep.subr.mxu0 %v929_v0 }
  0x46   : > { %724 = vmatpush3.msra.mxu1 %v387_v41  ;;  %766 = vmatpush3.msra.mxu0 %v502_v52 }
  0x47   : > { %767 = vmatprep.subr.mxu0 %v929_v0 }
  0x48   : > { %768 = vmatpush3.msra.mxu0 %v501_v3 }
  0x49   : > { %769 = vmatprep.subr.mxu0 %v929_v0 }
  0x4a   : > { %770 = vmatpush3.msra.mxu0 %v500_v4 }
  0x4b   : > { %771 = vmatprep.subr.mxu0 %v929_v0 }
  0x4c   : > { %772 = vmatpush3.msra.mxu0 %v499_v5 }
  0x4d   : > { %773 = vmatprep.subr.mxu0 %v929_v0 }
  0x4e   : > { %774 = vmatpush3.msra.mxu0 %v498_v6 }
  0x4f   : > { %775 = vmatprep.subr.mxu0 %v929_v0 }
  0x50   : > { %776 = vmatpush3.msra.mxu0 %v497_v7 }
  0xed   : > { %v380_v60 = vpop.f32.mrf.mxu0 }
  0xee   : > { %v381_v61 = vadd.f32 %v380_v60, %v303_v58 }
  0xef   : > { %v382_v62 = vpop.f32.mrf.mxu0 }
  0xf0   : > { %v383_v63 = vadd.f32 %v382_v62, %v307_v59  ;;  %v385_v2 = vmax.f32 %v381_v61, 0.0 }
  0xf2   : > { %v386_v1 = vmax.f32 %v383_v63, 0.0 }
  0xf4   : > { %490 = vmatprep.mubr.f32.mxu1 %v386_v1 }
  0xf5   : > { %491 = vmatmul.mubr.f32.vlgmr.msra.gmra.mxu1 %v385_v2 }
 0x1b5   : > { %v725_v8 = vpop.f32.mrf.mxu1 }
 0x1b7   : > { %v726_v10 = vpop.f32.mrf.mxu1 }
 0x1b8   : > { %v727_v11 = vadd.f32 %v726_v10, %v725_v8 }
 0x1ba   : > { %v493_v12 = vadd.f32 %v727_v11, %v687_v9 }
 0x1bc   : > { %v496_v13 = vmax.f32 %v493_v12, 0.0 }
 0x1be   : > { %778 = vmatmul.mubr.f32.vlgmr.msra.gmra.mxu0 %v496_v13 }
 0x27e   : > { %v586_v15 = vpop.f32.mrf.mxu0 }
 0x27f   : > { %v587_v0 = vadd.f32 %v688_v14, %v586_v15 }
 0x280   : > { %v779_v16 = vpop.f32.mrf.mxu0 }
 0x281   : > { %v590_v17 = vmax.f32 %v587_v0, 0.0 }
 0x283   : > { %592 = vst.msk [vmem:[%s284_s13] sm:$0xff] %vm591_vm2, %v590_v17 }
 0x284   : > { %873 = shalt.err (!%p870_p0)
}
 0x285   : > { %s874_s29 = scalar_lea.hbm %s605_s17, 128  ;;  %s878_s8 = scalar_lea.hbm %s1183_s7, 256 }
 0x286   : > { %p875_p1 = scmp.ne.s32.totalorder %s605_s17, %s874_s29  ;;  %p879_p4 = scmp.lt.s32.totalorder %s605_s17, %s1183_s7 }
 0x287   : > { %p880_p7 = scmp.lt.s32.totalorder %s878_s8, %s874_s29 }
 0x288   : > { %p876_p2 = pnand %p875_p1, %p1010_p5 }
 0x289   : > { %p881_p8 = por %p880_p7, %p879_p4 }
 0x28a   : > { %p877_p3 = pneg %p876_p2 }
 0x28c   : > { %p882_p6 = pnand %p881_p8, %p877_p3 }
 0x28e   : > { %885 = shalt.err (!%p882_p6)
}
 0x28f   : > { %784 = dma.vmem_to_hbm [thread:$0]  (%p1010_p5), %s608_s14, 128, %s605_s17, %s594_s18  }
 0x290 PF: > { %p796_p9 = scmp.ge.s32.totalorder %s924_s27, 2  ;;  %s619_s15 = sand.u32 1, %s912_s24  }
 0x291   : > { %p1187_p10 = scmp.ne.s32.totalorder %s1185_s12, 0  ;;  %s620_s16 = scalar_lea.sflag [#allocation4], %s619_s15 }
 0x293   : > { %p791_p11 = pnand %p796_p9, %p1187_p10 }
 0x295   : > { %p792_p12 = pneg %p791_p11 }
 0x297   : > { %907 = dma.done.wait (%p792_p12), %s620_s16, 128  }
 0x298   : > { %909 = vsyncadd (%p792_p12), %s620_s16, 4294967168  ;;  %p18_p13 = scmp.ge.s32.totalorder %s997_s30, 4   ;;  %s1188_s24 = smov %s916_s25 }
 0x299   : > { %s1189_s25 = smov %s920_s26  ;;  %s1190_s26 = smov %s1008_s10 }
 0x29a   : > { %s1191_s27 = smov %s997_s30  ;;  %20 = sbr.rel (!%p18_p13) target bundleno = 4 (0x4), region = 88 }
 0x29f   :  { %625 = vsyncpa [#allocation3], 1 }
 0x2a0   :  { %627 = vsyncpa [#allocation3 + $0x1], 1 }
 0x2a1   :  { %628 = vsyncpa [#allocation4], 1 }
 0x2a2   :  { %630 = vsyncpa [#allocation4 + $0x1], 1 }

</bundles_post_ra>
